<compile_context>
chip_gen: v7x
topology: tpu7x:2x2x1
jax: 0.10.0
libtpu: 0.0.40
codegen_flags: <defaults>
</compile_context>

<pallas_src>
import jax
import jax.numpy as jnp
from jax.experimental import pallas as pl
from jax.experimental.pallas import tpu as pltpu

LANE = 128     # lane width (last dim)
SUBLANE = 8    # f32 sublane width (second-to-last dim)

# Some JAX builds may reject single-buffered blocks; probed lazily and flipped.
_SINGLE_BUFFER_OK = True


def _round_up(x, m):
    return ((x + m - 1) // m) * m


def _cdiv(a, b):
    return -(-a // b)


def _vmem_limit_bytes():
    """~3/4 of per-core VMEM (48 MiB on v7x, 96 MiB on v5e/v6e); safe fallback."""
    cap = 64 * 1024 * 1024          # conservative fallback (v7x per-TC size)
    try:
        cap = int(pltpu.get_tpu_info().vmem_capacity_bytes)
    except Exception:
        pass
    return (cap * 3) // 4


def _choose_batch_tile(B, d_in, h_tile, d_out, num_h, x_dtype, w_dtype,
                       vmem_limit, max_rows):
    """Largest batch tile that fits the VMEM budget (with double-buffered x/out)."""
    x_bytes = jnp.dtype(x_dtype).itemsize
    w_bytes = jnp.dtype(w_dtype).itemsize
    row_align = 16 if w_bytes < 4 else SUBLANE       # bf16 packs 16 rows / vreg
    d_in_l = _round_up(d_in, LANE)
    d_out_l = _round_up(d_out, LANE)
    wbufs = 1 if (num_h == 1 and _SINGLE_BUFFER_OK) else 2
    fixed = (wbufs * (d_in_l * h_tile + h_tile * d_out_l) * w_bytes   # w1, w2
             + wbufs * h_tile * 4 + d_out_l * 4)                      # b1, b2 (f32)
    per_row = (2 * d_in_l * x_bytes       # x, double-buffered
               + 2 * d_out_l * x_bytes    # out, double-buffered
               + d_out_l * 4              # f32 accumulator scratch
               + h_tile * 4)              # live (tb, h_tile) f32 intermediate
    budget = int(vmem_limit * 0.75)       # headroom for compiler scratch
    avail = budget - fixed
    tb = avail // per_row if avail > 0 else row_align
    tb = max(row_align, (tb // row_align) * row_align)
    tb = min(tb, max_rows, _round_up(B, SUBLANE))
    tb = max(SUBLANE, (tb // SUBLANE) * SUBLANE)
    # v7x megacore: make sure a large batch yields >=2 tiles so both TCs get work.
    if tb >= _round_up(B, SUBLANE) and B >= 128:
        tb = _round_up(_cdiv(B, 2), SUBLANE)
    return int(tb)


def mlp_kernel(x_ref, w1_ref, b1_ref, w2_ref, b2_ref, o_ref, acc_ref):
    """relu(x @ w1 + b1) @ w2 + b2, hidden axis tiled on grid axis 1."""
    h_idx = pl.program_id(1)

    @pl.when(h_idx == 0)
    def _():
        acc_ref[...] = jnp.zeros_like(acc_ref)

    x = x_ref[...]
    w1 = w1_ref[...]
    if w1.dtype != x.dtype:            # narrow MXU operands when weights are bf16
        x = x.astype(w1.dtype)
    # fc1 chunk: (tb, d_in) @ (d_in, h_tile), f32 accumulation on the MXU
    h = jnp.dot(x, w1, preferred_element_type=jnp.float32)
    # bias + ReLU in f32 on the VPU (rides in spare VALU slots under MXU work)
    h = jnp.maximum(h + b1_ref[...], 0.0)
    w2 = w2_ref[...]
    if w2.dtype != h.dtype:
        h = h.astype(w2.dtype)
    # fc2 chunk: (tb, h_tile) @ (h_tile, d_out), accumulated in f32
    acc_ref[...] += jnp.dot(h, w2, preferred_element_type=jnp.float32)

    @pl.when(h_idx == pl.num_programs(1) - 1)
    def _():
        o_ref[...] = (acc_ref[...] + b2_ref[...]).astype(o_ref.dtype)


def _weight_spec(shape, index_map, resident):
    if resident and _SINGLE_BUFFER_OK:
        # Block index never changes -> single-buffer it (halves weight VMEM).
        return pl.BlockSpec(shape, index_map, pipeline_mode=pl.Buffered(1))
    return pl.BlockSpec(shape, index_map)


def _forward(x, params, *, max_block_batch):
    w1p, b1p, w2p, b2p, h_tile = params
    B, d_in = x.shape
    assert w1p.shape[0] == d_in
    h_p = w1p.shape[1]
    d_out = w2p.shape[1]
    num_h = h_p // h_tile
    out_dtype = x.dtype

    vmem_limit = _vmem_limit_bytes()
    tb = _choose_batch_tile(B, d_in, h_tile, d_out, num_h, x.dtype, w1p.dtype,
                            vmem_limit, max_block_batch)
    grid = (_cdiv(B, tb), num_h)
    resident = num_h == 1              # weights resident only if H fits one tile

    in_specs = [
        pl.BlockSpec((tb, d_in), lambda i, h: (i, 0)),                 # x (unpadded)
        _weight_spec((d_in, h_tile), lambda i, h: (0, h), resident),   # w1
        _weight_spec((1, h_tile), lambda i, h: (0, h), resident),      # b1 (f32)
        _weight_spec((h_tile, d_out), lambda i, h: (h, 0), resident),  # w2
        _weight_spec((1, d_out), lambda i, h: (0, 0), True),           # b2 (f32)
    ]
    out_specs = pl.BlockSpec((tb, d_out), lambda i, h: (i, 0))

    cost = pl.CostEstimate(
        flops=2 * B * d_in * h_p + 2 * B * h_p * d_out,
        transcendentals=0,
        bytes_accessed=int(x.size * x.dtype.itemsize
                           + w1p.size * w1p.dtype.itemsize
                           + b1p.size * b1p.dtype.itemsize
                           + w2p.size * w2p.dtype.itemsize
                           + b2p.size * b2p.dtype.itemsize
                           + B * d_out * jnp.dtype(out_dtype).itemsize),
    )

    return pl.pallas_call(
        mlp_kernel,
        out_shape=jax.ShapeDtypeStruct((B, d_out), out_dtype),
        grid=grid,
        in_specs=in_specs,
        out_specs=out_specs,
        scratch_shapes=[pltpu.VMEM((tb, d_out), jnp.float32)],
        compiler_params=pltpu.CompilerParams(
            dimension_semantics=("parallel", "arbitrary"),
            vmem_limit_bytes=vmem_limit,
        ),
        cost_estimate=cost,
    )(x, w1p, b1p, w2p, b2p)


def simple_nn_forward(x, params, *, max_block_batch=2048):
    """x: (B, d_in); params: output of prepare_params(). Returns (B, d_out)."""
    global _SINGLE_BUFFER_OK
    try:
        return _forward(x, params, max_block_batch=max_block_batch)
    except Exception:
        if not _SINGLE_BUFFER_OK:
            raise
        _SINGLE_BUFFER_OK = False      # retry with default double-buffered weights
        return _forward(x, params, max_block_batch=max_block_batch)


def prepare_params(w1, b1, w2, b2, *, weight_dtype=jnp.float32, h_tile_max=1024):
    """One-time prep: zero-pad the hidden dim to a multiple of the hidden tile
    (semantics-preserving for Linear->ReLU->Linear) and optionally store the
    weight matrices narrow (bf16) in HBM.  Biases stay f32."""
    assert h_tile_max % LANE == 0
    d_in, H = w1.shape
    h_tile = min(_round_up(H, LANE), h_tile_max)
    h_p = _round_up(H, h_tile)
    w1p = jnp.pad(w1, ((0, 0), (0, h_p - H))).astype(weight_dtype)
    b1p = jnp.pad(jnp.reshape(b1, (1, H)), ((0, 0), (0, h_p - H))).astype(jnp.float32)
    w2p = jnp.pad(w2, ((0, h_p - H), (0, 0))).astype(weight_dtype)
    b2p = jnp.reshape(b2, (1, -1)).astype(jnp.float32)
    return (w1p, b1p, w2p, b2p, h_tile)


def init_params(key, input_dim, hidden_dim, output_dim):
    """Deterministic init mirroring nn.Linear's uniform(-1/sqrt(fan_in), 1/sqrt(fan_in))."""
    k1, k2, k3, k4 = jax.random.split(key, 4)
    bound1 = 1.0 / (input_dim ** 0.5)
    bound2 = 1.0 / (hidden_dim ** 0.5)
    w1 = jax.random.uniform(k1, (input_dim, hidden_dim), jnp.float32, -bound1, bound1)
    b1 = jax.random.uniform(k2, (1, hidden_dim), jnp.float32, -bound1, bound1)
    w2 = jax.random.uniform(k3, (hidden_dim, output_dim), jnp.float32, -bound2, bound2)
    b2 = jax.random.uniform(k4, (1, output_dim), jnp.float32, -bound2, bound2)
    return w1, b1, w2, b2


if __name__ == "__main__":
    batch, input_dim, hidden_dim, output_dim = 8, 32, 64, 16

    key = jax.random.PRNGKey(0)
    kx, kp, kx2 = jax.random.split(key, 3)
    x = jax.random.normal(kx, (batch, input_dim), dtype=jnp.float32)
    w1, b1, w2, b2 = init_params(kp, input_dim, hidden_dim, output_dim)
    ref = jnp.maximum(x @ w1 + b1, 0.0) @ w2 + b2

    # f32 path (exact nn.Linear semantics), weights padded/prepared once.
    params_f32 = prepare_params(w1, b1, w2, b2)
    out = jax.block_until_ready(simple_nn_forward(x, params_f32))
    assert out.shape == (batch, output_dim)
    assert jnp.allclose(out, ref, atol=2e-5, rtol=2e-5)

    # bf16 weights stored narrow in HBM (MXU fast path on v5e/v6e/v7x),
    # f32 accumulation / bias / ReLU.
    params_bf16 = prepare_params(w1, b1, w2, b2, weight_dtype=jnp.bfloat16)
    out_bf16 = jax.block_until_ready(simple_nn_forward(x, params_bf16))
    assert jnp.allclose(out_bf16, ref, atol=2e-2, rtol=2e-2)

    # Multi-tile batch grid (B not a multiple of the tile) with unpadded x/out.
    x_big = jax.random.normal(kx2, (300, input_dim), dtype=jnp.float32)
    ref_big = jnp.maximum(x_big @ w1 + b1, 0.0) @ w2 + b2
    out_big = jax.block_until_ready(
        simple_nn_forward(x_big, params_f32, max_block_batch=128))
    assert out_big.shape == (300, output_dim)
    assert jnp.allclose(out_big, ref_big, atol=2e-5, rtol=2e-5)

    # Hidden-axis-tiled reduction path (num_h_tiles > 1) with the f32 accumulator.
    w1b, b1b, w2b, b2b = init_params(jax.random.PRNGKey(1), input_dim, 256, output_dim)
    ref_h = jnp.maximum(x @ w1b + b1b, 0.0) @ w2b + b2b
    params_h = prepare_params(w1b, b1b, w2b, b2b, h_tile_max=128)
    out_h = jax.block_until_ready(simple_nn_forward(x, params_h))
    assert jnp.allclose(out_h, ref_h, atol=2e-5, rtol=2e-5)

    print("KERNEL_OK")
</pallas_src>

<mosaic_0001>
module attributes {stable_mosaic.version = 11 : i64} {
  func.func @mlp_kernel(%arg0: i32, %arg1: i32, %arg2: memref<8x32xf32, #tpu.memory_space<vmem>>, %arg3: memref<32x128xf32, #tpu.memory_space<vmem>>, %arg4: memref<1x128xf32, #tpu.memory_space<vmem>>, %arg5: memref<128x16xf32, #tpu.memory_space<vmem>>, %arg6: memref<1x16xf32, #tpu.memory_space<vmem>>, %arg7: memref<8x16xf32, #tpu.memory_space<vmem>>, %arg8: memref<8x16xf32, #tpu.memory_space<vmem>>) attributes {dimension_semantics = [#tpu.dimension_semantics<parallel>, #tpu.dimension_semantics<arbitrary>], iteration_bounds = array<i64: 1, 1>, scalar_prefetch = 0 : i64, scratch_operands = 1 : i64, tpu.core_type = #tpu.core_type<tc>, window_params = [{transform_indices = @transform_0, window_bounds = array<i64: 8, 32>}, {pipeline_mode = #tpu.pipeline_mode<synchronous>, transform_indices = @transform_1, window_bounds = array<i64: 32, 128>}, {pipeline_mode = #tpu.pipeline_mode<synchronous>, transform_indices = @transform_2, window_bounds = array<i64: 1, 128>}, {pipeline_mode = #tpu.pipeline_mode<synchronous>, transform_indices = @transform_3, window_bounds = array<i64: 128, 16>}, {pipeline_mode = #tpu.pipeline_mode<synchronous>, transform_indices = @transform_4, window_bounds = array<i64: 1, 16>}, {transform_indices = @transform_5, window_bounds = array<i64: 8, 16>}]} {
    %c0_i32 = arith.constant 0 : i32
    %0 = arith.cmpi eq, %arg1, %c0_i32 : i32
    %1 = arith.extui %0 : i1 to i32
    %c0_i32_0 = arith.constant 0 : i32
    %2 = arith.cmpi ne, %1, %c0_i32_0 : i32
    scf.if %2 {
      %cst_16 = arith.constant 0.000000e+00 : f32
      %19 = vector.broadcast %cst_16 : f32 to vector<8x16xf32>
      %c0_17 = arith.constant 0 : index
      %c0_18 = arith.constant 0 : index
      %20 = vector.load %arg8[%c0_17, %c0_18] : memref<8x16xf32, #tpu.memory_space<vmem>>, vector<8x16xf32>
      tpu.vector_store %arg8[%c0_17, %c0_18], %19 {strides = array<i32>} : memref<8x16xf32, #tpu.memory_space<vmem>>, vector<8x16xf32>,
    } else {
    }
    %c0 = arith.constant 0 : index
    %c0_1 = arith.constant 0 : index
    %3 = vector.load %arg2[%c0, %c0_1] : memref<8x32xf32, #tpu.memory_space<vmem>>, vector<8x32xf32>
    %c0_2 = arith.constant 0 : index
    %c0_3 = arith.constant 0 : index
    %4 = vector.load %arg3[%c0_2, %c0_3] : memref<32x128xf32, #tpu.memory_space<vmem>>, vector<32x128xf32>
    %cst = arith.constant dense<0.000000e+00> : vector<8x128xf32>
    %5 = tpu.matmul %3, %4, %cst {dimension_numbers = #tpu.dot_dimension_numbers<[1], [0], [0], [1], [0, 0, 1, 1], [], []>} : vector<8x32xf32>, vector<32x128xf32>, vector<8x128xf32> -> vector<8x128xf32>
    %c0_4 = arith.constant 0 : index
    %c0_5 = arith.constant 0 : index
    %6 = vector.load %arg4[%c0_4, %c0_5] : memref<1x128xf32, #tpu.memory_space<vmem>>, vector<1x128xf32>
    %7 = vector.broadcast %6 : vector<1x128xf32> to vector<8x128xf32>
    %8 = arith.addf %5, %7 : vector<8x128xf32>
    %cst_6 = arith.constant 0.000000e+00 : f32
    %9 = vector.broadcast %cst_6 : f32 to vector<8x128xf32>
    %10 = arith.maximumf %8, %9 : vector<8x128xf32>
    %c0_7 = arith.constant 0 : index
    %c0_8 = arith.constant 0 : index
    %11 = vector.load %arg5[%c0_7, %c0_8] : memref<128x16xf32, #tpu.memory_space<vmem>>, vector<128x16xf32>
    %c0_9 = arith.constant 0 : index
    %c0_10 = arith.constant 0 : index
    %12 = vector.load %arg8[%c0_9, %c0_10] : memref<8x16xf32, #tpu.memory_space<vmem>>, vector<8x16xf32>
    %cst_11 = arith.constant dense<0.000000e+00> : vector<8x16xf32>
    %13 = tpu.matmul %10, %11, %cst_11 {dimension_numbers = #tpu.dot_dimension_numbers<[1], [0], [0], [1], [0, 0, 1, 1], [], []>} : vector<8x128xf32>, vector<128x16xf32>, vector<8x16xf32> -> vector<8x16xf32>
    %14 = arith.addf %12, %13 : vector<8x16xf32>
    %c0_12 = arith.constant 0 : index
    %c0_13 = arith.constant 0 : index
    %15 = vector.load %arg8[%c0_12, %c0_13] : memref<8x16xf32, #tpu.memory_space<vmem>>, vector<8x16xf32>
    tpu.vector_store %arg8[%c0_12, %c0_13], %14 {strides = array<i32>} : memref<8x16xf32, #tpu.memory_space<vmem>>, vector<8x16xf32>,
    %c0_i32_14 = arith.constant 0 : i32
    %16 = arith.cmpi eq, %arg1, %c0_i32_14 : i32
    %17 = arith.extui %16 : i1 to i32
    %c0_i32_15 = arith.constant 0 : i32
    %18 = arith.cmpi ne, %17, %c0_i32_15 : i32
    scf.if %18 {
      %c0_16 = arith.constant 0 : index
      %c0_17 = arith.constant 0 : index
      %19 = vector.load %arg8[%c0_16, %c0_17] : memref<8x16xf32, #tpu.memory_space<vmem>>, vector<8x16xf32>
      %c0_18 = arith.constant 0 : index
      %c0_19 = arith.constant 0 : index
      %20 = vector.load %arg6[%c0_18, %c0_19] : memref<1x16xf32, #tpu.memory_space<vmem>>, vector<1x16xf32>
      %21 = vector.broadcast %20 : vector<1x16xf32> to vector<8x16xf32>
      %22 = arith.addf %19, %21 : vector<8x16xf32>
      %c0_20 = arith.constant 0 : index
      %c0_21 = arith.constant 0 : index
      %23 = vector.load %arg7[%c0_20, %c0_21] : memref<8x16xf32, #tpu.memory_space<vmem>>, vector<8x16xf32>
      tpu.vector_store %arg7[%c0_20, %c0_21], %22 {strides = array<i32>} : memref<8x16xf32, #tpu.memory_space<vmem>>, vector<8x16xf32>,
    } else {
    }
    return
  }
  func.func @transform_0(%arg0: i32, %arg1: i32) -> (i32, i32) {
    %c0_i32 = arith.constant 0 : i32
    %c0_i32_0 = arith.constant 0 : i32
    return %arg0, %c0_i32 : i32, i32
  }
  func.func @transform_1(%arg0: i32, %arg1: i32) -> (i32, i32) {
    %c0_i32 = arith.constant 0 : i32
    %c0_i32_0 = arith.constant 0 : i32
    return %c0_i32, %arg1 : i32, i32
  }
  func.func @transform_2(%arg0: i32, %arg1: i32) -> (i32, i32) {
    %c0_i32 = arith.constant 0 : i32
    %c0_i32_0 = arith.constant 0 : i32
    return %c0_i32, %arg1 : i32, i32
  }
  func.func @transform_3(%arg0: i32, %arg1: i32) -> (i32, i32) {
    %c0_i32 = arith.constant 0 : i32
    %c0_i32_0 = arith.constant 0 : i32
    return %arg1, %c0_i32 : i32, i32
  }
  func.func @transform_4(%arg0: i32, %arg1: i32) -> (i32, i32) {
    %c0_i32 = arith.constant 0 : i32
    %c0_i32_0 = arith.constant 0 : i32
    %c0_i32_1 = arith.constant 0 : i32
    return %c0_i32, %c0_i32_0 : i32, i32
  }
  func.func @transform_5(%arg0: i32, %arg1: i32) -> (i32, i32) {
    %c0_i32 = arith.constant 0 : i32
    %c0_i32_0 = arith.constant 0 : i32
    return %arg0, %c0_i32 : i32, i32
  }
}

module attributes {stable_mosaic.version = 11 : i64} {
  func.func @mlp_kernel(%arg0: i32, %arg1: i32, %arg2: memref<8x32xf32, #tpu.memory_space<vmem>>, %arg3: memref<32x128xf32, #tpu.memory_space<vmem>>, %arg4: memref<1x128xf32, #tpu.memory_space<vmem>>, %arg5: memref<128x16xf32, #tpu.memory_space<vmem>>, %arg6: memref<1x16xf32, #tpu.memory_space<vmem>>, %arg7: memref<8x16xf32, #tpu.memory_space<vmem>>, %arg8: memref<8x16xf32, #tpu.memory_space<vmem>>) attributes {dimension_semantics = [#tpu.dimension_semantics<parallel>, #tpu.dimension_semantics<arbitrary>], iteration_bounds = array<i64: 1, 1>, scalar_prefetch = 0 : i64, scratch_operands = 1 : i64, tpu.core_type = #tpu.core_type<tc>, window_params = [{transform_indices = @transform_0, window_bounds = array<i64: 8, 32>}, {transform_indices = @transform_1, window_bounds = array<i64: 32, 128>}, {transform_indices = @transform_2, window_bounds = array<i64: 1, 128>}, {transform_indices = @transform_3, window_bounds = array<i64: 128, 16>}, {pipeline_mode = #tpu.pipeline_mode<synchronous>, transform_indices = @transform_4, window_bounds = array<i64: 1, 16>}, {transform_indices = @transform_5, window_bounds = array<i64: 8, 16>}]} {
    %c0_i32 = arith.constant 0 : i32
    %0 = arith.cmpi eq, %arg1, %c0_i32 : i32
    %1 = arith.extui %0 : i1 to i32
    %c0_i32_0 = arith.constant 0 : i32
    %2 = arith.cmpi ne, %1, %c0_i32_0 : i32
    scf.if %2 {
      %cst_16 = arith.constant 0.000000e+00 : f32
      %19 = vector.broadcast %cst_16 : f32 to vector<8x16xf32>
      %c0_17 = arith.constant 0 : index
      %c0_18 = arith.constant 0 : index
      %20 = vector.load %arg8[%c0_17, %c0_18] : memref<8x16xf32, #tpu.memory_space<vmem>>, vector<8x16xf32>
      tpu.vector_store %arg8[%c0_17, %c0_18], %19 {strides = array<i32>} : memref<8x16xf32, #tpu.memory_space<vmem>>, vector<8x16xf32>,
    } else {
    }
    %c0 = arith.constant 0 : index
    %c0_1 = arith.constant 0 : index
    %3 = vector.load %arg2[%c0, %c0_1] : memref<8x32xf32, #tpu.memory_space<vmem>>, vector<8x32xf32>
    %c0_2 = arith.constant 0 : index
    %c0_3 = arith.constant 0 : index
    %4 = vector.load %arg3[%c0_2, %c0_3] : memref<32x128xf32, #tpu.memory_space<vmem>>, vector<32x128xf32>
    %cst = arith.constant dense<0.000000e+00> : vector<8x128xf32>
    %5 = tpu.matmul %3, %4, %cst {dimension_numbers = #tpu.dot_dimension_numbers<[1], [0], [0], [1], [0, 0, 1, 1], [], []>} : vector<8x32xf32>, vector<32x128xf32>, vector<8x128xf32> -> vector<8x128xf32>
    %c0_4 = arith.constant 0 : index
    %c0_5 = arith.constant 0 : index
    %6 = vector.load %arg4[%c0_4, %c0_5] : memref<1x128xf32, #tpu.memory_space<vmem>>, vector<1x128xf32>
    %7 = vector.broadcast %6 : vector<1x128xf32> to vector<8x128xf32>
    %8 = arith.addf %5, %7 : vector<8x128xf32>
    %cst_6 = arith.constant 0.000000e+00 : f32
    %9 = vector.broadcast %cst_6 : f32 to vector<8x128xf32>
    %10 = arith.maximumf %8, %9 : vector<8x128xf32>
    %c0_7 = arith.constant 0 : index
    %c0_8 = arith.constant 0 : index
    %11 = vector.load %arg5[%c0_7, %c0_8] : memref<128x16xf32, #tpu.memory_space<vmem>>, vector<128x16xf32>
    %c0_9 = arith.constant 0 : index
    %c0_10 = arith.constant 0 : index
    %12 = vector.load %arg8[%c0_9, %c0_10] : memref<8x16xf32, #tpu.memory_space<vmem>>, vector<8x16xf32>
    %cst_11 = arith.constant dense<0.000000e+00> : vector<8x16xf32>
    %13 = tpu.matmul %10, %11, %cst_11 {dimension_numbers = #tpu.dot_dimension_numbers<[1], [0], [0], [1], [0, 0, 1, 1], [], []>} : vector<8x128xf32>, vector<128x16xf32>, vector<8x16xf32> -> vector<8x16xf32>
    %14 = arith.addf %12, %13 : vector<8x16xf32>
    %c0_12 = arith.constant 0 : index
    %c0_13 = arith.constant 0 : index
    %15 = vector.load %arg8[%c0_12, %c0_13] : memref<8x16xf32, #tpu.memory_space<vmem>>, vector<8x16xf32>
    tpu.vector_store %arg8[%c0_12, %c0_13], %14 {strides = array<i32>} : memref<8x16xf32, #tpu.memory_space<vmem>>, vector<8x16xf32>,
    %c0_i32_14 = arith.constant 0 : i32
    %16 = arith.cmpi eq, %arg1, %c0_i32_14 : i32
    %17 = arith.extui %16 : i1 to i32
    %c0_i32_15 = arith.constant 0 : i32
    %18 = arith.cmpi ne, %17, %c0_i32_15 : i32
    scf.if %18 {
      %c0_16 = arith.constant 0 : index
      %c0_17 = arith.constant 0 : index
      %19 = vector.load %arg8[%c0_16, %c0_17] : memref<8x16xf32, #tpu.memory_space<vmem>>, vector<8x16xf32>
      %c0_18 = arith.constant 0 : index
      %c0_19 = arith.constant 0 : index
      %20 = vector.load %arg6[%c0_18, %c0_19] : memref<1x16xf32, #tpu.memory_space<vmem>>, vector<1x16xf32>
      %21 = vector.broadcast %20 : vector<1x16xf32> to vector<8x16xf32>
      %22 = arith.addf %19, %21 : vector<8x16xf32>
      %c0_20 = arith.constant 0 : index
      %c0_21 = arith.constant 0 : index
      %23 = vector.load %arg7[%c0_20, %c0_21] : memref<8x16xf32, #tpu.memory_space<vmem>>, vector<8x16xf32>
      tpu.vector_store %arg7[%c0_20, %c0_21], %22 {strides = array<i32>} : memref<8x16xf32, #tpu.memory_space<vmem>>, vector<8x16xf32>,
    } else {
    }
    return
  }
  func.func @transform_0(%arg0: i32, %arg1: i32) -> (i32, i32) {
    %c0_i32 = arith.constant 0 : i32
    %c0_i32_0 = arith.constant 0 : i32
    return %arg0, %c0_i32 : i32, i32
  }
  func.func @transform_1(%arg0: i32, %arg1: i32) -> (i32, i32) {
    %c0_i32 = arith.constant 0 : i32
    %c0_i32_0 = arith.constant 0 : i32
    return %c0_i32, %arg1 : i32, i32
  }
  func.func @transform_2(%arg0: i32, %arg1: i32) -> (i32, i32) {
    %c0_i32 = arith.constant 0 : i32
    %c0_i32_0 = arith.constant 0 : i32
    return %c0_i32, %arg1 : i32, i32
  }
  func.func @transform_3(%arg0: i32, %arg1: i32) -> (i32, i32) {
    %c0_i32 = arith.constant 0 : i32
    %c0_i32_0 = arith.constant 0 : i32
    return %arg1, %c0_i32 : i32, i32
  }
  func.func @transform_4(%arg0: i32, %arg1: i32) -> (i32, i32) {
    %c0_i32 = arith.constant 0 : i32
    %c0_i32_0 = arith.constant 0 : i32
    %c0_i32_1 = arith.constant 0 : i32
    return %c0_i32, %c0_i32_0 : i32, i32
  }
  func.func @transform_5(%arg0: i32, %arg1: i32) -> (i32, i32) {
    %c0_i32 = arith.constant 0 : i32
    %c0_i32_0 = arith.constant 0 : i32
    return %arg0, %c0_i32 : i32, i32
  }
}

</mosaic_0001>

<bundles_post_ra>
// kernel: tpu_custom_call.1
= control target key start
LH: loop header
LB: loop body
LE: loop exit
PB: predicated region body
PF: predicated region fallthrough
CT: control target
= control target key end

     0   :  { %vm25_vm0 = vcmask 130048   ;;  %v360_v3 = vmov 0.0|0.0   ;;  %v361_v6 = vmov 0.0   ;;  %vm362_vm1 = vmmov 0   ;;  %s478_s0 = inlined_call_operand.vmem [shape: f32[8,32], index: 0, kind: input, shape index: {}]   ;;  %s479_s1 = inlined_call_operand.vmem [shape: f32[32,128], index: 1, kind: input, shape index: {}]   ;;  %s480_s2 = inlined_call_operand.vmem [shape: f32[1,128], index: 2, kind: input, shape index: {}]   ;;  %s481_s3 = inlined_call_operand.vmem [shape: f32[128,16], index: 3, kind: input, shape index: {}]   ;;  %s482_s4 = inlined_call_operand.vmem [shape: f32[1,16], index: 4, kind: input, shape index: {}]   ;;  %s483_s5 = inlined_call_operand.hbm [shape: f32[8,16], index: 5, kind: output, shape index: {}]  }
   0x1   :  { %v28_v0 = vld [vmem:[%s479_s1] sm:$0xff]  ;;  %v29_v1 = vld [vmem:[%s479_s1 + $0x8] sm:$0xff]  ;;  %v30_v2 = vld [vmem:[%s479_s1 + $0x10] sm:$0xff]  ;;  %302 = vmatprep.subr.bf16.mxu0 %v360_v3  ;;  %26 = vst.msk [vmem:[#allocation2] sm:$0xff] %vm25_vm0, %v361_v6  ;;  %308 = vmatprep.subr.bf16.mxu1 %v360_v3 }
   0x2   :  { %v303_v4 = vpack.c.bf16 %v29_v1, %v28_v0  ;;  %v31_v5 = vld [vmem:[%s479_s1 + $0x18] sm:$0xff]  ;;  %v114_v7 = vld [vmem:[%s481_s3] sm:$0xff]  ;;  %264 = vmatprep.mubr.msk.f32.mxu0 %vm362_vm1, %v361_v6  ;;  %v115_v8 = vld [vmem:[%s481_s3 + $0x8] sm:$0xff]  ;;  %299 = vmatprep.mubr.msk.f32.mxu1 %vm362_vm1, %v361_v6 }
   0x3   :  { %v116_v9 = vld [vmem:[%s481_s3 + $0x10] sm:$0xff]  ;;  %v117_v10 = vld [vmem:[%s481_s3 + $0x18] sm:$0xff]  ;;  %v306_v11 = vpack.c.bf16 %v31_v5, %v30_v2  ;;  %v309_v12 = vpack.c.bf16 %v115_v8, %v114_v7  ;;  %v118_v14 = vld [vmem:[%s481_s3 + $0x20] sm:$0xff] }
   0x4   :  { %304 = vmatpush3.bf16.msra.mxu0 %v303_v4  ;;  %v312_v13 = vpack.c.bf16 %v117_v10, %v116_v9  ;;  %v119_v15 = vld [vmem:[%s481_s3 + $0x28] sm:$0xff] }
   0x5   :  { %305 = vmatprep.subr.bf16.mxu0 %v360_v3  ;;  %310 = vmatpush3.bf16.msra.mxu1 %v309_v12 }
   0x6   :  { %311 = vmatprep.subr.bf16.mxu1 %v360_v3 }
   0x7   :  { %10 = vsyncpa [#allocation4], 0  ;;  %v27_v16 = vld [vmem:[%s478_s0] sm:$0xff]  ;;  %vm39_vm2 = vcmask 261120   ;;  %v315_v17 = vpack.c.bf16 %v119_v15, %v118_v14  ;;  %v120_v18 = vld [vmem:[%s481_s3 + $0x30] sm:$0xff] }
   0x8   :  { %307 = vmatpush3.bf16.msra.mxu0 %v306_v11  ;;  %v121_v19 = vld [vmem:[%s481_s3 + $0x38] sm:$0xff]  ;;  %v122_v21 = vld [vmem:[%s481_s3 + $0x40] sm:$0xff]  ;;  %v123_v22 = vld [vmem:[%s481_s3 + $0x48] sm:$0xff] }
   0x9   :  { %313 = vmatpush3.bf16.msra.mxu1 %v312_v13  ;;  %v318_v20 = vpack.c.bf16 %v121_v19, %v120_v18  ;;  %v321_v23 = vpack.c.bf16 %v123_v22, %v122_v21  ;;  %v124_v24 = vld [vmem:[%s481_s3 + $0x50] sm:$0xff]  ;;  %v125_v25 = vld [vmem:[%s481_s3 + $0x58] sm:$0xff]  ;;  %v126_v27 = vld [vmem:[%s481_s3 + $0x60] sm:$0xff] }
   0xa   :  { %314 = vmatprep.subr.bf16.mxu1 %v360_v3  ;;  %v324_v26 = vpack.c.bf16 %v125_v25, %v124_v24  ;;  %v127_v28 = vld [vmem:[%s481_s3 + $0x68] sm:$0xff]  ;;  %v128_v30 = vld [vmem:[%s481_s3 + $0x70] sm:$0xff]  ;;  %v129_v31 = vld [vmem:[%s481_s3 + $0x78] sm:$0xff]  ;;  %s363_s3 = smov [#allocation3]  }
   0xb   :  { %265 = vmatmul.mubr.msk.f32.vlgmr.msra.gmra.mrb[0].mxu0 %vm39_vm2, %v27_v16  ;;  %v327_v29 = vpack.c.bf16 %v127_v28, %v126_v27  ;;  %v330_v32 = vpack.c.bf16 %v129_v31, %v128_v30  ;;  %v231_v33 = vld [vmem:[%s480_s2] ss:$0 sm:$0xff]  ;;  %s223_s11 = sshll.u32 %s363_s3, 4  ;;  %s224_s11 = int_to_ptr.vmem [resolvable:$true] %s223_s11 }
   0xc   :  { %v130_v38 = vld [vmem:[#allocation2] sm:$0xff]  ;;  %s336_s2 = scalar_lea.vmem %s224_s11, 128  ;;  %p341_p1 = scmp.lt.s32.totalorder %s224_s11, %s224_s11 }
   0xd   :  { %316 = vmatpush3.bf16.msra.mxu1 %v315_v17  ;;  %v233_v42 = vld [vmem:[%s482_s4] ss:$0 sm:$0xff]  ;;  %p337_p0 = scmp.ne.s32.totalorder %s224_s11, %s336_s2  ;;  %p342_p2 = scmp.lt.s32.totalorder %s336_s2, %s336_s2 }
   0xe   :  { %317 = vmatprep.subr.bf16.mxu1 %v360_v3 }
   0xf   :  { %p343_p3 = por %p342_p2, %p341_p1 }
  0x11   :  { %319 = vmatpush3.bf16.msra.mxu1 %v318_v20  ;;  %p344_p4 = pnand %p343_p3, %p337_p0 }
  0x12   :  { %320 = vmatprep.subr.bf16.mxu1 %v360_v3 }
  0x15   :  { %322 = vmatpush3.bf16.msra.mxu1 %v321_v23 }
  0x16   :  { %323 = vmatprep.subr.bf16.mxu1 %v360_v3 }
  0x19   :  { %325 = vmatpush3.bf16.msra.mxu1 %v324_v26 }
  0x1a   :  { %326 = vmatprep.subr.bf16.mxu1 %v360_v3 }
  0x1d   :  { %328 = vmatpush3.bf16.msra.mxu1 %v327_v29 }
  0x1e   :  { %329 = vmatprep.subr.bf16.mxu1 %v360_v3 }
  0x21   :  { %331 = vmatpush3.bf16.msra.mxu1 %v330_v32 }
  0xde   :  { %v109_v34 = vpop.f32.mrb[0].mxu0 }
  0xdf   :  { %v110_v35 = vadd.f32 %v231_v33, %v109_v34  ;;  %v266_v36 = vpop.f32.mrb[1].mxu0 }
  0xe1   :  { %v113_v37 = vmax.f32 %v110_v35, 0.0 }
  0xe3   :  { %300 = vmatmul.mubr.f32.vlgmr.msra.gmra.mrb[0].mxu1 %v113_v37 }
 0x1b6   :  { %v197_v39 = vpop.f32.mrb[0].mxu1 }
 0x1b7   :  { %v201_v40 = vadd.f32 %v197_v39, %v130_v38  ;;  %v301_v41 = vpop.f32.mrb[1].mxu1 }
 0x1b9   :  { %203 = vst.msk [vmem:[#allocation2] sm:$0xff] %vm25_vm0, %v201_v40 }
 0x1c0   :  { %v207_v43 = vld [vmem:[#allocation2] sm:$0xff] }
 0x1c1   :  { %v215_v44 = vadd.f32 %v233_v42, %v207_v43 }
 0x1c3   :  { %216 = vst.msk [vmem:[#allocation3] sm:$0xff] %vm25_vm0, %v215_v44 }
 0x1c4   :  { %347 = shalt.err (!%p344_p4)
}
 0x1c5   :  { %s348_s14 = scalar_lea.hbm %s483_s5, 128 }
 0x1c6   :  { %p349_p5 = scmp.ne.s32.totalorder %s483_s5, %s348_s14  ;;  %p352_p6 = scmp.lt.u32.totalorder %s348_s14, %s483_s5 }
 0x1c8   :  { %p354_p7 = pnand %p352_p6, %p349_p5 }
 0x1ca   :  { %357 = shalt.err (!%p354_p7)
}
 0x1cb   :  { %226 = dma.vmem_to_hbm [thread:$0]  %s224_s11, 128, %s483_s5, [#allocation4]  }
 0x1cc   :  { %358 = dma.done.wait [#allocation4], 128  }
 0x1cd   :  { %359 = vsyncadd [#allocation4], 4294967168 }
 0x1ce   :  { %230 = vsyncpa [#allocation4], 1 }

// kernel: tpu_custom_call.1
= control target key start
LH: loop header
LB: loop body
LE: loop exit
PB: predicated region body
PF: predicated region fallthrough
CT: control target
= control target key end

     0   :  { %vm25_vm0 = vcmask 130048   ;;  %v360_v3 = vmov 0.0|0.0   ;;  %v361_v6 = vmov 0.0   ;;  %vm362_vm1 = vmmov 0   ;;  %s478_s0 = inlined_call_operand.vmem [shape: f32[8,32], index: 0, kind: input, shape index: {}]   ;;  %s479_s1 = inlined_call_operand.vmem [shape: f32[32,128], index: 1, kind: input, shape index: {}]   ;;  %s480_s2 = inlined_call_operand.vmem [shape: f32[1,128], index: 2, kind: input, shape index: {}]   ;;  %s481_s3 = inlined_call_operand.vmem [shape: f32[128,16], index: 3, kind: input, shape index: {}]   ;;  %s482_s4 = inlined_call_operand.vmem [shape: f32[1,16], index: 4, kind: input, shape index: {}]   ;;  %s483_s5 = inlined_call_operand.hbm [shape: f32[8,16], index: 5, kind: output, shape index: {}]  }
   0x1   :  { %v28_v0 = vld [vmem:[%s479_s1] sm:$0xff]  ;;  %v29_v1 = vld [vmem:[%s479_s1 + $0x8] sm:$0xff]  ;;  %v30_v2 = vld [vmem:[%s479_s1 + $0x10] sm:$0xff]  ;;  %302 = vmatprep.subr.bf16.mxu0 %v360_v3  ;;  %26 = vst.msk [vmem:[#allocation2] sm:$0xff] %vm25_vm0, %v361_v6  ;;  %308 = vmatprep.subr.bf16.mxu1 %v360_v3 }
   0x2   :  { %v303_v4 = vpack.c.bf16 %v29_v1, %v28_v0  ;;  %v31_v5 = vld [vmem:[%s479_s1 + $0x18] sm:$0xff]  ;;  %v114_v7 = vld [vmem:[%s481_s3] sm:$0xff]  ;;  %264 = vmatprep.mubr.msk.f32.mxu0 %vm362_vm1, %v361_v6  ;;  %v115_v8 = vld [vmem:[%s481_s3 + $0x8] sm:$0xff]  ;;  %299 = vmatprep.mubr.msk.f32.mxu1 %vm362_vm1, %v361_v6 }
   0x3   :  { %v116_v9 = vld [vmem:[%s481_s3 + $0x10] sm:$0xff]  ;;  %v117_v10 = vld [vmem:[%s481_s3 + $0x18] sm:$0xff]  ;;  %v306_v11 = vpack.c.bf16 %v31_v5, %v30_v2  ;;  %v309_v12 = vpack.c.bf16 %v115_v8, %v114_v7  ;;  %v118_v14 = vld [vmem:[%s481_s3 + $0x20] sm:$0xff] }
   0x4   :  { %304 = vmatpush3.bf16.msra.mxu0 %v303_v4  ;;  %v312_v13 = vpack.c.bf16 %v117_v10, %v116_v9  ;;  %v119_v15 = vld [vmem:[%s481_s3 + $0x28] sm:$0xff] }
   0x5   :  { %305 = vmatprep.subr.bf16.mxu0 %v360_v3  ;;  %310 = vmatpush3.bf16.msra.mxu1 %v309_v12 }
   0x6   :  { %311 = vmatprep.subr.bf16.mxu1 %v360_v3 }
   0x7   :  { %10 = vsyncpa [#allocation4], 0  ;;  %v27_v16 = vld [vmem:[%s478_s0] sm:$0xff]  ;;  %vm39_vm2 = vcmask 261120   ;;  %v315_v17 = vpack.c.bf16 %v119_v15, %v118_v14  ;;  %v120_v18 = vld [vmem:[%s481_s3 + $0x30] sm:$0xff] }
   0x8   :  { %307 = vmatpush3.bf16.msra.mxu0 %v306_v11  ;;  %v121_v19 = vld [vmem:[%s481_s3 + $0x38] sm:$0xff]  ;;  %v122_v21 = vld [vmem:[%s481_s3 + $0x40] sm:$0xff]  ;;  %v123_v22 = vld [vmem:[%s481_s3 + $0x48] sm:$0xff] }
   0x9   :  { %313 = vmatpush3.bf16.msra.mxu1 %v312_v13  ;;  %v318_v20 = vpack.c.bf16 %v121_v19, %v120_v18  ;;  %v321_v23 = vpack.c.bf16 %v123_v22, %v122_v21  ;;  %v124_v24 = vld [vmem:[%s481_s3 + $0x50] sm:$0xff]  ;;  %v125_v25 = vld [vmem:[%s481_s3 + $0x58] sm:$0xff]  ;;  %v126_v27 = vld [vmem:[%s481_s3 + $0x60] sm:$0xff] }
   0xa   :  { %314 = vmatprep.subr.bf16.mxu1 %v360_v3  ;;  %v324_v26 = vpack.c.bf16 %v125_v25, %v124_v24  ;;  %v127_v28 = vld [vmem:[%s481_s3 + $0x68] sm:$0xff]  ;;  %v128_v30 = vld [vmem:[%s481_s3 + $0x70] sm:$0xff]  ;;  %v129_v31 = vld [vmem:[%s481_s3 + $0x78] sm:$0xff]  ;;  %s363_s3 = smov [#allocation3]  }
   0xb   :  { %265 = vmatmul.mubr.msk.f32.vlgmr.msra.gmra.mrb[0].mxu0 %vm39_vm2, %v27_v16  ;;  %v327_v29 = vpack.c.bf16 %v127_v28, %v126_v27  ;;  %v330_v32 = vpack.c.bf16 %v129_v31, %v128_v30  ;;  %v231_v33 = vld [vmem:[%s480_s2] ss:$0 sm:$0xff]  ;;  %s223_s11 = sshll.u32 %s363_s3, 4  ;;  %s224_s11 = int_to_ptr.vmem [resolvable:$true] %s223_s11 }
   0xc   :  { %v130_v38 = vld [vmem:[#allocation2] sm:$0xff]  ;;  %s336_s2 = scalar_lea.vmem %s224_s11, 128  ;;  %p341_p1 = scmp.lt.s32.totalorder %s224_s11, %s224_s11 }
   0xd   :  { %316 = vmatpush3.bf16.msra.mxu1 %v315_v17  ;;  %v233_v42 = vld [vmem:[%s482_s4] ss:$0 sm:$0xff]  ;;  %p337_p0 = scmp.ne.s32.totalorder %s224_s11, %s336_s2  ;;  %p342_p2 = scmp.lt.s32.totalorder %s336_s2, %s336_s2 }
   0xe   :  { %317 = vmatprep.subr.bf16.mxu1 %v360_v3 }
   0xf   :  { %p343_p3 = por %p342_p2, %p341_p1 }
  0x11   :  { %319 = vmatpush3.bf16.msra.mxu1 %v318_v20  ;;  %p344_p4 = pnand %p343_p3, %p337_p0 }
  0x12   :  { %320 = vmatprep.subr.bf16.mxu1 %v360_v3 }
  0x15   :  { %322 = vmatpush3.bf16.msra.mxu1 %v321_v23 }
  0x16   :  { %323 = vmatprep.subr.bf16.mxu1 %v360_v3 }
  0x19   :  { %325 = vmatpush3.bf16.msra.mxu1 %v324_v26 }
  0x1a   :  { %326 = vmatprep.subr.bf16.mxu1 %v360_v3 }
  0x1d   :  { %328 = vmatpush3.bf16.msra.mxu1 %v327_v29 }
  0x1e   :  { %329 = vmatprep.subr.bf16.mxu1 %v360_v3 }
  0x21   :  { %331 = vmatpush3.bf16.msra.mxu1 %v330_v32 }
  0xde   :  { %v109_v34 = vpop.f32.mrb[0].mxu0 }
  0xdf   :  { %v110_v35 = vadd.f32 %v231_v33, %v109_v34  ;;  %v266_v36 = vpop.f32.mrb[1].mxu0 }
  0xe1   :  { %v113_v37 = vmax.f32 %v110_v35, 0.0 }
  0xe3   :  { %300 = vmatmul.mubr.f32.vlgmr.msra.gmra.mrb[0].mxu1 %v113_v37 }
 0x1b6   :  { %v197_v39 = vpop.f32.mrb[0].mxu1 }
 0x1b7   :  { %v201_v40 = vadd.f32 %v197_v39, %v130_v38  ;;  %v301_v41 = vpop.f32.mrb[1].mxu1 }
 0x1b9   :  { %203 = vst.msk [vmem:[#allocation2] sm:$0xff] %vm25_vm0, %v201_v40 }
 0x1c0   :  { %v207_v43 = vld [vmem:[#allocation2] sm:$0xff] }
 0x1c1   :  { %v215_v44 = vadd.f32 %v233_v42, %v207_v43 }
 0x1c3   :  { %216 = vst.msk [vmem:[#allocation3] sm:$0xff] %vm25_vm0, %v215_v44 }
 0x1c4   :  { %347 = shalt.err (!%p344_p4)
}
 0x1c5   :  { %s348_s14 = scalar_lea.hbm %s483_s5, 128 }
 0x1c6   :  { %p349_p5 = scmp.ne.s32.totalorder %s483_s5, %s348_s14  ;;  %p352_p6 = scmp.lt.u32.totalorder %s348_s14, %s483_s5 }
 0x1c8   :  { %p354_p7 = pnand %p352_p6, %p349_p5 }
 0x1ca   :  { %357 = shalt.err (!%p354_p7)
}
 0x1cb   :  { %226 = dma.vmem_to_hbm [thread:$0]  %s224_s11, 128, %s483_s5, [#allocation4]  }
 0x1cc   :  { %358 = dma.done.wait [#allocation4], 128  }
 0x1cd   :  { %359 = vsyncadd [#allocation4], 4294967168 }
 0x1ce   :  { %230 = vsyncpa [#allocation4], 1 }

</bundles_post_ra>
